<compile_context>
chip_gen: v7x
topology: tpu7x:2x2x1
jax: 0.10.0
libtpu: 0.0.40
codegen_flags: <defaults>
</compile_context>

<pallas_src>
import jax
import jax.numpy as jnp
from jax import lax
from jax.experimental import pallas as pl
from jax.experimental.pallas import tpu as pltpu


# ---------------------------------------------------------------------------
# Helpers (plain JAX)
# ---------------------------------------------------------------------------
def _full_spec(shape):
    """BlockSpec covering the whole array (gridless pallas_call)."""
    return pl.BlockSpec(shape, lambda: (0,) * len(shape))


def _round_up(x, m):
    return ((x + m - 1) // m) * m


def xavier_uniform(key, shape, gain=1.0):
    fan_in, fan_out = shape
    a = gain * jnp.sqrt(6.0 / (fan_in + fan_out))
    return jax.random.uniform(key, shape, jnp.float32, minval=-a, maxval=a)


def normalized_adj(edge_index, num_nodes):
    """Dense GCN-normalized adjacency matching PyG gcn_norm semantics:
    duplicate edges sum, and a weight-1 self loop is added only to nodes that
    do not already have one.  A[t, s] aggregates source s into target t."""
    src, dst = edge_index[0], edge_index[1]
    a = jnp.zeros((num_nodes, num_nodes), jnp.float32).at[dst, src].add(1.0)
    diag = jnp.diagonal(a)
    a = a + jnp.diag(jnp.where(diag > 0.0, 0.0, 1.0))
    deg = a.sum(axis=1)                         # in-degree incl. self loops
    d_inv_sqrt = jnp.where(deg > 0.0, lax.rsqrt(deg), 0.0)
    return d_inv_sqrt[:, None] * a * d_inv_sqrt[None, :]


# ---------------------------------------------------------------------------
# Fused encoder kernel: conv1(+ReLU) -> packed mu|logvar head -> reparameterize
# ---------------------------------------------------------------------------
def encoder_kernel(a_ref, x_ref, w1_ref, b1_ref, wh_ref, bh_ref, eps_ref,
                   mu_ref, lv_ref, z_ref):
    out_dim = mu_ref.shape[1]
    a = a_ref[...]                                            # bf16 [N, N]

    # conv1: F_in <= F_hidden -> aggregate first (N^2 * F_in), then project.
    ax = jnp.dot(a, x_ref[...].astype(jnp.bfloat16),
                 preferred_element_type=jnp.float32)          # [N, F_in] f32
    h = jnp.dot(ax.astype(jnp.bfloat16), w1_ref[...],
                preferred_element_type=jnp.float32) + b1_ref[...]
    h = jnp.maximum(h, 0.0)                                   # ReLU (f32 VPU)

    # fused mu|logvar heads: project first (2*out <= hidden), then aggregate.
    hw = jnp.dot(h.astype(jnp.bfloat16), wh_ref[...],
                 preferred_element_type=jnp.float32)          # [N, 2*out]
    heads = jnp.dot(a, hw.astype(jnp.bfloat16),
                    preferred_element_type=jnp.float32) + bh_ref[...]

    mu = heads[:, :out_dim]
    logvar = heads[:, out_dim:]
    mu_ref[...] = mu
    lv_ref[...] = logvar
    # reparameterize: z = mu + eps * exp(0.5 * logvar)   (f32 EUP exp)
    z_ref[...] = mu + eps_ref[...] * jnp.exp(0.5 * logvar)


def encode(a_hat_bf16, x, eps, params):
    n = x.shape[0]
    hidden = params["w1"].shape[1]
    out_dim = params["w_heads"].shape[1] // 2
    w1 = params["w1"].astype(jnp.bfloat16)
    wh = params["w_heads"].astype(jnp.bfloat16)
    b1 = params["b1"].reshape(1, hidden)
    bh = params["b_heads"].reshape(1, 2 * out_dim)
    out_shape = tuple(jax.ShapeDtypeStruct((n, out_dim), jnp.float32)
                      for _ in range(3))
    return pl.pallas_call(
        encoder_kernel,
        out_shape=out_shape,
        in_specs=[_full_spec(a_hat_bf16.shape), _full_spec(x.shape),
                  _full_spec(w1.shape), _full_spec(b1.shape),
                  _full_spec(wh.shape), _full_spec(bh.shape),
                  _full_spec(eps.shape)],
        out_specs=tuple(_full_spec((n, out_dim)) for _ in range(3)),
    )(a_hat_bf16, x, w1, b1, wh, bh, eps)


# ---------------------------------------------------------------------------
# Fused decoder kernel: gather(z[i], z[j]) -> concat -> Linear -> ReLU ->
#                       width-1 Linear (as VPU/XLU reduce) -> Sigmoid
# ---------------------------------------------------------------------------
def decoder_kernel(idx_ref, z_ref, w1_ref, b1_ref, w2_ref, b2_ref, o_ref,
                   feat_ref):
    e_pad = feat_ref.shape[0]
    out_dim = z_ref.shape[1]

    def gather(e, carry):
        i = idx_ref[0, e]                     # SMEM scalar reads
        j = idx_ref[1, e]
        feat_ref[pl.ds(e, 1), pl.ds(0, out_dim)] = z_ref[pl.ds(i, 1), :]
        feat_ref[pl.ds(e, 1), pl.ds(out_dim, out_dim)] = z_ref[pl.ds(j, 1), :]
        return carry

    lax.fori_loop(0, e_pad, gather, 0)

    h = jnp.dot(feat_ref[...], w1_ref[...],
                preferred_element_type=jnp.float32) + b1_ref[...]
    h = jnp.maximum(h, 0.0)
    # Width-1 Linear as VPU multiply + cross-sublane (XLU) reduce; result is
    # produced directly as a lane-major (1, E_pad) row -> lane-dense store.
    logit = jnp.sum(h.T * w2_ref[...], axis=0, keepdims=True) + b2_ref[...]
    o_ref[...] = jax.nn.sigmoid(logit)


def decode(z, edge_label_index, params):
    _, out_dim = z.shape
    e = edge_label_index.shape[1]
    e_pad = max(8, _round_up(e, 8))
    _, in_dim = params["dw1"].shape

    # Pad indices (with node 0) so every scratch row is well-defined.
    idx = jnp.zeros((2, e_pad), jnp.int32).at[:, :e].set(
        edge_label_index.astype(jnp.int32))
    w1d = params["dw1"]                        # (hidden, in_dim) = (2*out, in)
    b1d = params["db1"].reshape(1, in_dim)
    w2d = params["dw2"].reshape(in_dim, 1)     # column for lane-broadcast mul
    b2d = params["db2"].reshape(1, 1)

    out = pl.pallas_call(
        decoder_kernel,
        out_shape=jax.ShapeDtypeStruct((1, e_pad), jnp.float32),
        grid_spec=pltpu.PrefetchScalarGridSpec(
            num_scalar_prefetch=1,             # edge indices -> SMEM
            grid=(1,),
            in_specs=[
                pl.BlockSpec(z.shape, lambda i, idx_ref: (0, 0)),
                pl.BlockSpec(w1d.shape, lambda i, idx_ref: (0, 0)),
                pl.BlockSpec(b1d.shape, lambda i, idx_ref: (0, 0)),
                pl.BlockSpec(w2d.shape, lambda i, idx_ref: (0, 0)),
                pl.BlockSpec(b2d.shape, lambda i, idx_ref: (0, 0)),
            ],
            out_specs=pl.BlockSpec((1, e_pad), lambda i, idx_ref: (0, 0)),
            scratch_shapes=[pltpu.VMEM((e_pad, 2 * out_dim), jnp.float32)],
        ),
    )(idx, z, w1d, b1d, w2d, b2d)
    return out[0, :e]                          # == .squeeze() of (E, 1)


# ---------------------------------------------------------------------------
# Parameters & forward
# ---------------------------------------------------------------------------
def init_params(key, in_dim, hidden_dim, out_dim):
    ks = jax.random.split(key, 8)
    relu_gain = jnp.sqrt(2.0)                  # nn.init.calculate_gain('relu')
    w_mu = xavier_uniform(ks[1], (hidden_dim, out_dim))
    w_lv = xavier_uniform(ks[2], (hidden_dim, out_dim))
    return {
        # GCN weights stored (in, out); PyG applies x @ W^T with W (out, in),
        # equivalent to x @ W_here.
        "w1": xavier_uniform(ks[0], (in_dim, hidden_dim), gain=relu_gain),
        "b1": jnp.zeros((hidden_dim,), jnp.float32),
        # mu | logvar heads packed into one matmul.
        "w_heads": jnp.concatenate([w_mu, w_lv], axis=1),
        "b_heads": jnp.zeros((2 * out_dim,), jnp.float32),
        # decoder: Linear(hidden, in) -> ReLU -> Linear(in, 1) -> Sigmoid
        "dw1": xavier_uniform(ks[3], (hidden_dim, in_dim)),
        "db1": 0.01 * jax.random.normal(ks[4], (in_dim,), jnp.float32),
        "dw2": xavier_uniform(ks[5], (in_dim, 1)),
        "db2": 0.01 * jax.random.normal(ks[6], (1,), jnp.float32),
    }


def linkpred_forward(params, x, edge_index, edge_label_index, eps):
    n = x.shape[0]
    hidden = params["w1"].shape[1]
    out_dim = params["w_heads"].shape[1] // 2
    # The decoder's first Linear consumes concat(z_i, z_j) of width 2*out_dim,
    # so the module is only self-consistent when 2*out_dim == hidden_dim.
    assert 2 * out_dim == hidden, "LinkPred requires 2*out_dim == hidden_dim"

    a_hat = normalized_adj(edge_index, n).astype(jnp.bfloat16)  # MXU operand
    mu, logvar, z = encode(a_hat, x, eps, params)
    x_cons = decode(z, edge_label_index, params)
    return mu, logvar, z, x_cons


# ---------------------------------------------------------------------------
# Main
# ---------------------------------------------------------------------------
if __name__ == "__main__":
    N = 16                       # nodes
    IN_DIM = 16
    HIDDEN_DIM = 32
    OUT_DIM = HIDDEN_DIM // 2    # 16 (module self-consistency)
    NUM_EDGES = 40
    NUM_LABEL_EDGES = 8

    key = jax.random.PRNGKey(0)
    k_param, k_x, k_ei, k_eli, k_eps = jax.random.split(key, 5)

    params = init_params(k_param, IN_DIM, HIDDEN_DIM, OUT_DIM)

    x = jax.random.normal(k_x, (N, IN_DIM), jnp.float32)
    edge_index = jax.random.randint(k_ei, (2, NUM_EDGES), 0, N, jnp.int32)
    edge_label_index = jax.random.randint(k_eli, (2, NUM_LABEL_EDGES), 0, N,
                                          jnp.int32)
    eps = jax.random.normal(k_eps, (N, OUT_DIM), jnp.float32)  # randn_like(std)

    fwd = jax.jit(linkpred_forward)
    mu, logvar, z, x_cons = fwd(params, x, edge_index, edge_label_index, eps)
    jax.block_until_ready((mu, logvar, z, x_cons))

    assert mu.shape == (N, OUT_DIM)
    assert logvar.shape == (N, OUT_DIM)
    assert z.shape == (N, OUT_DIM)
    assert x_cons.shape == (NUM_LABEL_EDGES,)
    assert bool(jnp.all(jnp.isfinite(x_cons)))
    assert bool(jnp.all((x_cons >= 0.0) & (x_cons <= 1.0)))   # sigmoid output

    print("KERNEL_OK")
</pallas_src>

<mosaic_0001>
module attributes {stable_mosaic.version = 11 : i64} {
  func.func @decoder_kernel(%arg0: i32, %arg1: memref<2x8xi32, #tpu.memory_space<smem>>, %arg2: memref<16x16xf32, #tpu.memory_space<vmem>>, %arg3: memref<32x16xf32, #tpu.memory_space<vmem>>, %arg4: memref<1x16xf32, #tpu.memory_space<vmem>>, %arg5: memref<16x1xf32, #tpu.memory_space<vmem>>, %arg6: memref<1x1xf32, #tpu.memory_space<vmem>>, %arg7: memref<1x8xf32, #tpu.memory_space<vmem>>, %arg8: memref<8x32xf32, #tpu.memory_space<vmem>>) attributes {dimension_semantics = [#tpu.dimension_semantics<arbitrary>], iteration_bounds = array<i64: 1>, scalar_prefetch = 1 : i64, scratch_operands = 1 : i64, tpu.core_type = #tpu.core_type<tc>, window_params = [{pipeline_mode = #tpu.pipeline_mode<synchronous>, transform_indices = @transform_0, window_bounds = array<i64: 16, 16>}, {pipeline_mode = #tpu.pipeline_mode<synchronous>, transform_indices = @transform_1, window_bounds = array<i64: 32, 16>}, {pipeline_mode = #tpu.pipeline_mode<synchronous>, transform_indices = @transform_2, window_bounds = array<i64: 1, 16>}, {pipeline_mode = #tpu.pipeline_mode<synchronous>, transform_indices = @transform_3, window_bounds = array<i64: 16, 1>}, {pipeline_mode = #tpu.pipeline_mode<synchronous>, transform_indices = @transform_4, window_bounds = array<i64: 1, 1>}, {pipeline_mode = #tpu.pipeline_mode<synchronous>, transform_indices = @transform_5, window_bounds = array<i64: 1, 8>}]} {
    %c0_i32 = arith.constant 0 : i32
    %c8_i32 = arith.constant 8 : i32
    %0 = arith.addi %c0_i32, %c8_i32 : i32
    %c1_i32 = arith.constant 1 : i32
    scf.for %arg9 = %c0_i32 to %0 step %c1_i32  : i32 {
      %c0_15 = arith.constant 0 : index
      %24 = arith.index_cast %arg9 : i32 to index
      %25 = memref.load %arg1[%c0_15, %24] : memref<2x8xi32, #tpu.memory_space<smem>>
      %c1 = arith.constant 1 : index
      %26 = arith.index_cast %arg9 : i32 to index
      %27 = memref.load %arg1[%c1, %26] : memref<2x8xi32, #tpu.memory_space<smem>>
      %28 = arith.index_cast %25 : i32 to index
      %c0_16 = arith.constant 0 : index
      %29 = vector.load %arg2[%28, %c0_16] : memref<16x16xf32, #tpu.memory_space<vmem>>, vector<1x16xf32>
      %30 = arith.index_cast %arg9 : i32 to index
      %c0_17 = arith.constant 0 : index
      %31 = vector.load %arg8[%30, %c0_17] : memref<8x32xf32, #tpu.memory_space<vmem>>, vector<1x16xf32>
      tpu.vector_store %arg8[%30, %c0_17], %29 {strides = array<i32>} : memref<8x32xf32, #tpu.memory_space<vmem>>, vector<1x16xf32>,
      %32 = arith.index_cast %27 : i32 to index
      %c0_18 = arith.constant 0 : index
      %33 = vector.load %arg2[%32, %c0_18] : memref<16x16xf32, #tpu.memory_space<vmem>>, vector<1x16xf32>
      %34 = arith.index_cast %arg9 : i32 to index
      %c16 = arith.constant 16 : index
      %35 = vector.load %arg8[%34, %c16] : memref<8x32xf32, #tpu.memory_space<vmem>>, vector<1x16xf32>
      tpu.vector_store %arg8[%34, %c16], %33 {strides = array<i32>} : memref<8x32xf32, #tpu.memory_space<vmem>>, vector<1x16xf32>,
    }
    %c8_i32_0 = arith.constant 8 : i32
    %c0 = arith.constant 0 : index
    %c0_1 = arith.constant 0 : index
    %1 = vector.load %arg8[%c0, %c0_1] : memref<8x32xf32, #tpu.memory_space<vmem>>, vector<8x32xf32>
    %c0_2 = arith.constant 0 : index
    %c0_3 = arith.constant 0 : index
    %2 = vector.load %arg3[%c0_2, %c0_3] : memref<32x16xf32, #tpu.memory_space<vmem>>, vector<32x16xf32>
    %cst = arith.constant dense<0.000000e+00> : vector<8x16xf32>
    %3 = tpu.matmul %1, %2, %cst {dimension_numbers = #tpu.dot_dimension_numbers<[1], [0], [0], [1], [0, 0, 1, 1], [], []>} : vector<8x32xf32>, vector<32x16xf32>, vector<8x16xf32> -> vector<8x16xf32>
    %c0_4 = arith.constant 0 : index
    %c0_5 = arith.constant 0 : index
    %4 = vector.load %arg4[%c0_4, %c0_5] : memref<1x16xf32, #tpu.memory_space<vmem>>, vector<1x16xf32>
    %5 = vector.broadcast %4 : vector<1x16xf32> to vector<8x16xf32>
    %6 = arith.addf %3, %5 : vector<8x16xf32>
    %cst_6 = arith.constant 0.000000e+00 : f32
    %7 = vector.broadcast %cst_6 : f32 to vector<8x16xf32>
    %8 = arith.maximumf %6, %7 : vector<8x16xf32>
    %9 = tpu.transpose %8, [1, 0] : vector<8x16xf32> -> vector<16x8xf32>
    %c0_7 = arith.constant 0 : index
    %c0_8 = arith.constant 0 : index
    %10 = vector.load %arg5[%c0_7, %c0_8] : memref<16x1xf32, #tpu.memory_space<vmem>>, vector<16x1xf32>
    %11 = vector.broadcast %10 : vector<16x1xf32> to vector<16x8xf32>
    %12 = arith.mulf %9, %11 : vector<16x8xf32>
    %cst_9 = arith.constant dense<0.000000e+00> : vector<8xf32>
    %13 = vector.multi_reduction <add>, %12, %cst_9 [0] : vector<16x8xf32> to vector<8xf32>
    %14 = vector.shape_cast %13 : vector<8xf32> to vector<1x8xf32>
    %c0_10 = arith.constant 0 : index
    %c0_11 = arith.constant 0 : index
    %15 = vector.load %arg6[%c0_10, %c0_11] : memref<1x1xf32, #tpu.memory_space<vmem>>, vector<1x1xf32>
    %16 = vector.broadcast %15 : vector<1x1xf32> to vector<1x8xf32>
    %17 = arith.addf %14, %16 : vector<1x8xf32>
    %18 = arith.negf %17 : vector<1x8xf32>
    %19 = math.exp %18 : vector<1x8xf32>
    %cst_12 = arith.constant 1.000000e+00 : f32
    %20 = vector.broadcast %cst_12 : f32 to vector<1x8xf32>
    %21 = arith.addf %20, %19 : vector<1x8xf32>
    %22 = arith.divf %20, %21 : vector<1x8xf32>
    %c0_13 = arith.constant 0 : index
    %c0_14 = arith.constant 0 : index
    %23 = vector.load %arg7[%c0_13, %c0_14] : memref<1x8xf32, #tpu.memory_space<vmem>>, vector<1x8xf32>
    tpu.vector_store %arg7[%c0_13, %c0_14], %22 {strides = array<i32>} : memref<1x8xf32, #tpu.memory_space<vmem>>, vector<1x8xf32>,
    return
  }
  func.func @transform_0(%arg0: i32, %arg1: memref<2x8xi32, #tpu.memory_space<smem>>) -> (i32, i32) {
    %c0_i32 = arith.constant 0 : i32
    %c0_i32_0 = arith.constant 0 : i32
    %c0_i32_1 = arith.constant 0 : i32
    return %c0_i32, %c0_i32_0 : i32, i32
  }
  func.func @transform_1(%arg0: i32, %arg1: memref<2x8xi32, #tpu.memory_space<smem>>) -> (i32, i32) {
    %c0_i32 = arith.constant 0 : i32
    %c0_i32_0 = arith.constant 0 : i32
    %c0_i32_1 = arith.constant 0 : i32
    return %c0_i32, %c0_i32_0 : i32, i32
  }
  func.func @transform_2(%arg0: i32, %arg1: memref<2x8xi32, #tpu.memory_space<smem>>) -> (i32, i32) {
    %c0_i32 = arith.constant 0 : i32
    %c0_i32_0 = arith.constant 0 : i32
    %c0_i32_1 = arith.constant 0 : i32
    return %c0_i32, %c0_i32_0 : i32, i32
  }
  func.func @transform_3(%arg0: i32, %arg1: memref<2x8xi32, #tpu.memory_space<smem>>) -> (i32, i32) {
    %c0_i32 = arith.constant 0 : i32
    %c0_i32_0 = arith.constant 0 : i32
    %c0_i32_1 = arith.constant 0 : i32
    return %c0_i32, %c0_i32_0 : i32, i32
  }
  func.func @transform_4(%arg0: i32, %arg1: memref<2x8xi32, #tpu.memory_space<smem>>) -> (i32, i32) {
    %c0_i32 = arith.constant 0 : i32
    %c0_i32_0 = arith.constant 0 : i32
    %c0_i32_1 = arith.constant 0 : i32
    return %c0_i32, %c0_i32_0 : i32, i32
  }
  func.func @transform_5(%arg0: i32, %arg1: memref<2x8xi32, #tpu.memory_space<smem>>) -> (i32, i32) {
    %c0_i32 = arith.constant 0 : i32
    %c0_i32_0 = arith.constant 0 : i32
    %c0_i32_1 = arith.constant 0 : i32
    return %c0_i32, %c0_i32_0 : i32, i32
  }
}

module attributes {stable_mosaic.version = 11 : i64} {
  func.func @encoder_kernel(%arg0: memref<16x16xbf16, #tpu.memory_space<vmem>>, %arg1: memref<16x16xf32, #tpu.memory_space<vmem>>, %arg2: memref<16x32xbf16, #tpu.memory_space<vmem>>, %arg3: memref<1x32xf32, #tpu.memory_space<vmem>>, %arg4: memref<32x32xbf16, #tpu.memory_space<vmem>>, %arg5: memref<1x32xf32, #tpu.memory_space<vmem>>, %arg6: memref<16x16xf32, #tpu.memory_space<vmem>>, %arg7: memref<16x16xf32, #tpu.memory_space<vmem>>, %arg8: memref<16x16xf32, #tpu.memory_space<vmem>>, %arg9: memref<16x16xf32, #tpu.memory_space<vmem>>) attributes {dimension_semantics = [], scalar_prefetch = 0 : i64, scratch_operands = 0 : i64, tpu.core_type = #tpu.core_type<tc>} {
    %c0 = arith.constant 0 : index
    %c0_0 = arith.constant 0 : index
    %0 = vector.load %arg0[%c0, %c0_0] : memref<16x16xbf16, #tpu.memory_space<vmem>>, vector<16x16xbf16>
    %c0_1 = arith.constant 0 : index
    %c0_2 = arith.constant 0 : index
    %1 = vector.load %arg1[%c0_1, %c0_2] : memref<16x16xf32, #tpu.memory_space<vmem>>, vector<16x16xf32>
    %2 = arith.truncf %1 : vector<16x16xf32> to vector<16x16xbf16>
    %cst = arith.constant dense<0.000000e+00> : vector<16x16xf32>
    %3 = tpu.matmul %0, %2, %cst {dimension_numbers = #tpu.dot_dimension_numbers<[1], [0], [0], [1], [0, 0, 1, 1], [], []>} : vector<16x16xbf16>, vector<16x16xbf16>, vector<16x16xf32> -> vector<16x16xf32>
    %4 = arith.truncf %3 : vector<16x16xf32> to vector<16x16xbf16>
    %c0_3 = arith.constant 0 : index
    %c0_4 = arith.constant 0 : index
    %5 = vector.load %arg2[%c0_3, %c0_4] : memref<16x32xbf16, #tpu.memory_space<vmem>>, vector<16x32xbf16>
    %cst_5 = arith.constant dense<0.000000e+00> : vector<16x32xf32>
    %6 = tpu.matmul %4, %5, %cst_5 {dimension_numbers = #tpu.dot_dimension_numbers<[1], [0], [0], [1], [0, 0, 1, 1], [], []>} : vector<16x16xbf16>, vector<16x32xbf16>, vector<16x32xf32> -> vector<16x32xf32>
    %c0_6 = arith.constant 0 : index
    %c0_7 = arith.constant 0 : index
    %7 = vector.load %arg3[%c0_6, %c0_7] : memref<1x32xf32, #tpu.memory_space<vmem>>, vector<1x32xf32>
    %8 = vector.broadcast %7 : vector<1x32xf32> to vector<16x32xf32>
    %9 = arith.addf %6, %8 : vector<16x32xf32>
    %cst_8 = arith.constant 0.000000e+00 : f32
    %10 = vector.broadcast %cst_8 : f32 to vector<16x32xf32>
    %11 = arith.maximumf %9, %10 : vector<16x32xf32>
    %12 = arith.truncf %11 : vector<16x32xf32> to vector<16x32xbf16>
    %c0_9 = arith.constant 0 : index
    %c0_10 = arith.constant 0 : index
    %13 = vector.load %arg4[%c0_9, %c0_10] : memref<32x32xbf16, #tpu.memory_space<vmem>>, vector<32x32xbf16>
    %cst_11 = arith.constant dense<0.000000e+00> : vector<16x32xf32>
    %14 = tpu.matmul %12, %13, %cst_11 {dimension_numbers = #tpu.dot_dimension_numbers<[1], [0], [0], [1], [0, 0, 1, 1], [], []>} : vector<16x32xbf16>, vector<32x32xbf16>, vector<16x32xf32> -> vector<16x32xf32>
    %15 = arith.truncf %14 : vector<16x32xf32> to vector<16x32xbf16>
    %cst_12 = arith.constant dense<0.000000e+00> : vector<16x32xf32>
    %16 = tpu.matmul %0, %15, %cst_12 {dimension_numbers = #tpu.dot_dimension_numbers<[1], [0], [0], [1], [0, 0, 1, 1], [], []>} : vector<16x16xbf16>, vector<16x32xbf16>, vector<16x32xf32> -> vector<16x32xf32>
    %c0_13 = arith.constant 0 : index
    %c0_14 = arith.constant 0 : index
    %17 = vector.load %arg5[%c0_13, %c0_14] : memref<1x32xf32, #tpu.memory_space<vmem>>, vector<1x32xf32>
    %18 = vector.broadcast %17 : vector<1x32xf32> to vector<16x32xf32>
    %19 = arith.addf %16, %18 : vector<16x32xf32>
    %20 = vector.extract_strided_slice %19 {offsets = [0, 0], sizes = [16, 16], strides = [1, 1]} : vector<16x32xf32> to vector<16x16xf32>
    %21 = vector.extract_strided_slice %19 {offsets = [0, 16], sizes = [16, 16], strides = [1, 1]} : vector<16x32xf32> to vector<16x16xf32>
    %c0_15 = arith.constant 0 : index
    %c0_16 = arith.constant 0 : index
    %22 = vector.load %arg7[%c0_15, %c0_16] : memref<16x16xf32, #tpu.memory_space<vmem>>, vector<16x16xf32>
    tpu.vector_store %arg7[%c0_15, %c0_16], %20 {strides = array<i32>} : memref<16x16xf32, #tpu.memory_space<vmem>>, vector<16x16xf32>,
    %c0_17 = arith.constant 0 : index
    %c0_18 = arith.constant 0 : index
    %23 = vector.load %arg8[%c0_17, %c0_18] : memref<16x16xf32, #tpu.memory_space<vmem>>, vector<16x16xf32>
    tpu.vector_store %arg8[%c0_17, %c0_18], %21 {strides = array<i32>} : memref<16x16xf32, #tpu.memory_space<vmem>>, vector<16x16xf32>,
    %c0_19 = arith.constant 0 : index
    %c0_20 = arith.constant 0 : index
    %24 = vector.load %arg6[%c0_19, %c0_20] : memref<16x16xf32, #tpu.memory_space<vmem>>, vector<16x16xf32>
    %cst_21 = arith.constant 5.000000e-01 : f32
    %25 = vector.broadcast %cst_21 : f32 to vector<16x16xf32>
    %26 = arith.mulf %25, %21 : vector<16x16xf32>
    %27 = math.exp %26 : vector<16x16xf32>
    %28 = arith.mulf %24, %27 : vector<16x16xf32>
    %29 = arith.addf %20, %28 : vector<16x16xf32>
    %c0_22 = arith.constant 0 : index
    %c0_23 = arith.constant 0 : index
    %30 = vector.load %arg9[%c0_22, %c0_23] : memref<16x16xf32, #tpu.memory_space<vmem>>, vector<16x16xf32>
    tpu.vector_store %arg9[%c0_22, %c0_23], %29 {strides = array<i32>} : memref<16x16xf32, #tpu.memory_space<vmem>>, vector<16x16xf32>,
    return
  }
}

</mosaic_0001>

<bundles_post_ra>
// kernel: linkpred_forward.3
= control target key start
LH: loop header
LB: loop body
LE: loop exit
PB: predicated region body
PF: predicated region fallthrough
CT: control target
= control target key end

     0   :  { %s424_s0 = inlined_call_operand.vmem [shape: s32[2,8], index: 0, kind: input, shape index: {}]   ;;  %s425_s1 = inlined_call_operand.vmem [shape: f32[16,16], index: 1, kind: input, shape index: {}]   ;;  %s426_s2 = inlined_call_operand.vmem [shape: f32[32,16], index: 2, kind: input, shape index: {}]   ;;  %s427_s3 = inlined_call_operand.vmem [shape: f32[1,16], index: 3, kind: input, shape index: {}]   ;;  %s428_s4 = inlined_call_operand.vmem [shape: f32[16,1], index: 4, kind: input, shape index: {}]   ;;  %s429_s6 = inlined_call_operand.hbm [shape: f32[1,8], index: 6, kind: output, shape index: {}]   ;;  %s430_s5 = inlined_call_operand.<no memory space> [shape: f32[1,1], index: 5, kind: input, shape index: {}]  }
   0x1   :  { %s11_s23 = sshll.u32 %s424_s0, 4  ;;  %v15_v0 = vstv %s430_s5  ;;  %s12_s23 = int_to_ptr.vmem [resolvable:$true] %s11_s23 }
   0x2   :  { %16 = vst [vmem:[#allocation5] sm:$0x1] %v15_v0  ;;  %s291_s26 = scalar_lea.vmem %s12_s23, 32  ;;  %p296_p1 = scmp.lt.s32.totalorder %s12_s23, %s12_s23 }
   0x3   :  { %p292_p0 = scmp.ne.s32.totalorder %s12_s23, %s291_s26  ;;  %p297_p2 = scmp.lt.s32.totalorder %s291_s26, %s291_s26 }
   0x5   :  { %p298_p3 = por %p297_p2, %p296_p1 }
   0x7   :  { %p299_p4 = pnand %p298_p3, %p292_p0 }
   0x9   :  { %302 = shalt.err (!%p299_p4)  }
   0xa   :  { %s337_s27 = smov [#allocation4]  }
   0xb   :  { %14 = dma.vmem_to_smem %s12_s23, 32, %s337_s27, [#allocation3] }
   0xc   :  { %329 = dma.done.wait [#allocation3], 32 }
   0xd   :  { %330 = vsyncadd [#allocation3], 4294967264 }
   0xe   :  { %18 = sfence }
   0xf   :  { %19 = vsyncpa [#allocation7], 0  ;;  %s333_s0 = smov 0  }
  0x10 LB: > { %s37_s5 = sshra.s32 %s335_s0, 7  ;;  %s42_s28 = sand.u32 127, %s335_s0  ;;  %vm48_vm0 = vcmask 122880   ;;  %vm56_vm1 = vcmask 254080   ;;  %s335_s0 = sphi %s333_s0, %s35_s0  }
  0x11   : > { %s246_s29 = sshll.u32 %s37_s5, 7  ;;  %s36_s30 = sld [smem:[#allocation4 + %s335_s0]] }
  0x12   : > { %s247_s7 = sadd.s32 128, %s246_s29  ;;  %s47_s13 = scalar_lea.vmem [#allocation2], %s335_s0 }
  0x13   : > { %s43_s8 = sadd.s32 %s247_s7, %s42_s28  ;;  %s338_s17 = smov 16  }
  0x14   : > { %s44_s9 = sld [smem:[#allocation4 + %s43_s8]]  ;;  %s35_s0 = sadd.s32 1, %s335_s0  }
  0x15   : > { %p32_p5 = scmp.ge.s32.totalorder %s35_s0, 8  }
  0x16   :  { %v59_v4 = vld [vmem:[%s426_s2] sm:$0xff] (%p32_p5)  ;;  %v60_v5 = vld [vmem:[%s426_s2 + $0x8] sm:$0xff] (%p32_p5)  ;;  %v61_v6 = vld [vmem:[%s426_s2 + $0x10] sm:$0xff] (%p32_p5)  ;;  %v339_v7 = vmov (%p32_p5), 0.0|0.0   ;;  %vm340_vm2 = vmmov (%p32_p5), 0   ;;  %v341_v10 = vmov (%p32_p5), 0.0   ;;  %v207_v31 = vlaneseq (%p32_p5) }
  0x17   : > { %s45_s12 = scalar_lea.vmem %s425_s1, %s36_s30  ;;  %264 = vmatprep.subr.bf16.mxu0 (%p32_p5), %v339_v7  ;;  %v265_v8 = vpack.c.bf16 (%p32_p5), %v60_v5, %v59_v4  ;;  %v62_v9 = vld [vmem:[%s426_s2 + $0x18] sm:$0xff] (%p32_p5)  ;;  %261 = vmatprep.mubr.msk.f32.mxu0 (%p32_p5), %vm340_vm2, %v341_v10  ;;  %v201_v11 = vld [vmem:[#allocation5] sm:$0x1] (%p32_p5)  ;;  %v342_v12 = vmov (%p32_p5), 0   ;;  %vm70_vm3 = vcmask (%p32_p5), 261120   ;;  %v177_v15 = vld [vmem:[%s428_s4] sm:$0xff] (%p32_p5) }
  0x18   : > { %v46_v1 = vld [vmem:[%s45_s12] sm:$0x1]  ;;  %286 = vset.pattern.permute.xlu1 (%p32_p5), %v342_v12  ;;  %285 = vset.pattern.permute.xlu0 (%p32_p5), %v342_v12  ;;  %v268_v13 = vpack.c.bf16 (%p32_p5), %v62_v9, %v61_v6  ;;  %v178_v16 = vld [vmem:[%s428_s4 + $0x8] sm:$0xff] (%p32_p5)  ;;  %vm191_vm4 = vcmask (%p32_p5), 64512   ;;  %v208_v34 = vshrl.u32 (%p32_p5), %v207_v31, 7  ;;  %vm218_vm5 = vcmask (%p32_p5), 57344  }
  0x19   : > { %49 = vst.msk [vmem:[%s47_s13] sm:$0x1] %vm48_vm0, %v46_v1  ;;  %266 = vmatpush3.bf16.msra.mxu0 (%p32_p5), %v265_v8  ;;  %204 = vperm.xlu1 (%p32_p5), %286, %v201_v11   ;;  %v243_v17 = vld [vmem:[%s427_s3] ss:$0 sm:$0xff] (%p32_p5)  ;;  %s343_s3 = smov (%p32_p5), [#allocation6]  }
  0x1a   : > { %s50_s16 = scalar_lea.vmem %s425_s1, %s44_s9  ;;  %267 = vmatprep.subr.bf16.mxu0 (%p32_p5), %v339_v7  ;;  %v209_v37 = vsub.s32 (%p32_p5), 0, %v208_v34  ;;  %s226_s4 = sshll.u32 (%p32_p5), %s343_s3, 4  ;;  %s227_s4 = int_to_ptr.vmem [resolvable:$true] %s226_s4 }
  0x1b   : > { %v51_v2 = vld [vmem:[%s50_s16] sm:$0x1]  ;;  %s303_s28 = scalar_lea.vmem (%p32_p5), %s227_s4, 16  ;;  %s307_s29 = scalar_lea.vmem (%p32_p5), %s227_s4, 32 }
  0x1c   : > { %53 = vrot.lane.b32.xlu0 %v51_v2, %s338_s17  ;;  %p304_p6 = scmp.ne.s32.totalorder (%p32_p5), %s227_s4, %s303_s28  ;;  %p308_p7 = scmp.lt.s32.totalorder (%p32_p5), %s227_s4, %s227_s4 }
  0x1d   :  { %269 = vmatpush3.bf16.msra.mxu0 (%p32_p5), %v268_v13  ;;  %p309_p8 = scmp.lt.s32.totalorder (%p32_p5), %s307_s29, %s303_s28 }
  0x1f   :  { %p310_p9 = por (%p32_p5), %p309_p8, %p308_p7 }
  0x20   :  { %181 = vperm.xlu0 (%p32_p5), %285, %v177_v15  }
  0x21   :  { %p311_p10 = pnand (%p32_p5), %p310_p9, %p304_p6 }
  0x24   :  { %186 = vperm.xlu0 (%p32_p5), %285, %v178_v16  }
  0x89   :  { %34 = sbr.rel (!%p32_p5) target bundleno = 16 (0x10), region = 50 }
  0x8e   : > { %v54_v3 = vpop.permute.xlu0 %53 }
  0x8f   : > { %57 = vst.msk [vmem:[%s47_s13] sm:$0x1] %vm56_vm1, %v54_v3 }
  0x96   :  { %v58_v14 = vld [vmem:[#allocation2] sm:$0xff] }
  0x97   :  { %262 = vmatmul.mubr.msk.f32.vlgmr.msra.gmra.mrb[0].mxu0 %vm70_vm3, %v58_v14 }
  0x98   :  { %v205_v22 = vpop.permute.xlu1 %204 }
  0x99   :  { %v210_v40 = vrot.slane %v205_v22, %v209_v37 }
  0x9f   :  { %v182_v23 = vpop.permute.xlu0 %181 }
  0xa3   :  { %v187_v26 = vpop.permute.xlu0 %186 }
 0x16a   :  { %v140_v18 = vpop.f32.mrb[0].mxu0 }
 0x16b   :  { %v141_v19 = vadd.f32 %v243_v17, %v140_v18  ;;  %v263_v20 = vpop.f32.mrb[1].mxu0 }
 0x16d   :  { %v144_v21 = vmax.f32 %v141_v19, 0.0 }
 0x16f   :  { %145 = vxpose.xlu1.b32.start.end [1/1] (short) (narrow) %v144_v21, 16 }
 0x1ef   :  { %v161_v24 = vpop.trf.xlu1 }
 0x1f0   :  { %v189_v25 = vmul.f32 %v182_v23, %v161_v24 }
 0x1f2   :  { %v192_v29 = vsel %vm191_vm4, %v189_v25, 0.0 }
 0x1f3   :  { %v162_v27 = vpop.trf.xlu1 }
 0x1f4   :  { %v190_v28 = vmul.f32 %v187_v26, %v162_v27 }
 0x1f6   :  { %v193_v30 = vsel %vm191_vm4, %v190_v28, 0.0 }
 0x1f7   :  { %v194_v32 = vadd.f32 %v193_v30, %v192_v29 }
 0x1f9   :  { %v195_v33 = vrot.slane %v194_v32, 4 }
 0x1fb   :  { %v196_v35 = vadd.f32 %v195_v33, %v194_v32 }
 0x1fd   :  { %v197_v36 = vrot.slane %v196_v35, 2 }
 0x1ff   :  { %v198_v38 = vadd.f32 %v197_v36, %v196_v35 }
 0x201   :  { %v199_v39 = vrot.slane %v198_v38, 1 }
 0x203   :  { %v200_v41 = vadd.f32 %v199_v39, %v198_v38 }
 0x205   :  { %v211_v42 = vadd.f32 %v210_v40, %v200_v41 }
 0x207   :  { %v245_v43 = vmul.f32 -1.442695, %v211_v42 }
 0x209   :  { %287 = vpow2.f32 %v245_v43 }
 0x213   :  { %v288_v44 = vpop.eup %287 }
 0x214   :  { %v215_v45 = vadd.f32 1.0, %v288_v44 }
 0x216   :  { %289 = vrcp.f32 %v215_v45 }
 0x220   :  { %v290_v46 = vpop.eup %289 }
 0x221   :  { %219 = vst.msk [vmem:[#allocation6] sm:$0x1] %vm218_vm5, %v290_v46 }
 0x222   :  { %314 = shalt.err (!%p311_p10)
}
 0x223   :  { %s315_s8 = scalar_lea.hbm %s429_s6, 16 }
 0x224   :  { %p316_p11 = scmp.ne.s32.totalorder %s429_s6, %s315_s8  ;;  %p319_p12 = scmp.lt.u32.totalorder %s315_s8, %s429_s6 }
 0x226   :  { %p321_p13 = pnand %p319_p12, %p316_p11 }
 0x228   :  { %324 = shalt.err (!%p321_p13)
}
 0x229   :  { %229 = dma.vmem_to_hbm [thread:$0]  %s227_s4, 16, %s429_s6, [#allocation7]  }
 0x22a   :  { %331 = dma.done.wait [#allocation7], 16  }
 0x22b   :  { %332 = vsyncadd [#allocation7], 4294967280 }
 0x22c   :  { %233 = vsyncpa [#allocation7], 1 }

// kernel: linkpred_forward.2
= control target key start
LH: loop header
LB: loop body
LE: loop exit
PB: predicated region body
PF: predicated region fallthrough
CT: control target
= control target key end

     0   :  { %15 = vsyncpa [#allocation3], 0  ;;  %v438_v2 = vmov 0.0   ;;  %vm439_vm0 = vmmov 0   ;;  %vm42_vm1 = vcmask 130048   ;;  %s572_s0 = inlined_call_operand.vmem [shape: bf16[16,16], index: 0, kind: input, shape index: {}]   ;;  %s573_s1 = inlined_call_operand.vmem [shape: f32[16,16], index: 1, kind: input, shape index: {}]   ;;  %s574_s2 = inlined_call_operand.vmem [shape: bf16[16,32], index: 2, kind: input, shape index: {}]   ;;  %s575_s3 = inlined_call_operand.vmem [shape: f32[1,32], index: 3, kind: input, shape index: {}]   ;;  %s576_s4 = inlined_call_operand.vmem [shape: bf16[32,32], index: 4, kind: input, shape index: {}]   ;;  %s577_s5 = inlined_call_operand.vmem [shape: f32[1,32], index: 5, kind: input, shape index: {}]   ;;  %s578_s6 = inlined_call_operand.vmem [shape: f32[16,16], index: 6, kind: input, shape index: {}]   ;;  %s579_s7 = inlined_call_operand.hbm [shape: f32[16,16], index: 7, kind: output, shape index: {0}]   ;;  %s580_s8 = inlined_call_operand.hbm [shape: f32[16,16], index: 8, kind: output, shape index: {1}]   ;;  %s581_s9 = inlined_call_operand.vmem [shape: f32[16,16], index: 9, kind: output, shape index: {2}]  }
   0x1   :  { %v34_v0 = vld [vmem:[%s573_s1] sm:$0xff]  ;;  %v35_v1 = vld [vmem:[%s573_s1 + $0x8] sm:$0xff]  ;;  %349 = vmatprep.subr.bf16.mxu0 %v438_v2  ;;  %351 = vmatprep.mubr.msk.bf16.mxu0 %vm439_vm0, %v438_v2 }
   0x2   :  { %v36_v3 = vpack.c.bf16 %v35_v1, %v34_v0  ;;  %v382_v4 = vld [vmem:[%s572_s0] sm:$0xff]   ;;  %355 = vmatprep.subr.bf16.mxu1 %v438_v2  ;;  %357 = vmatprep.mubr.msk.bf16.mxu1 %vm439_vm0, %v438_v2 }
   0x4   :  { %350 = vmatpush3.bf16.msra.mxu0 %v36_v3 }
   0x5   :  { %16 = vsyncpa [#allocation5], 0  ;;  %361 = vmatprep.subr.bf16.mxu0 %v438_v2  ;;  %v383_v5 = vld [vmem:[%s574_s2] sm:$0xff]   ;;  %v385_v12 = vld [vmem:[%s576_s4 + $0x8] sm:$0xff]   ;;  %vm166_vm2 = vcmask 261120   ;;  %s440_s20 = smov 112  }
   0x6   :  { %356 = vmatpush3.bf16.msra.mxu1 %v383_v5  ;;  %v384_v11 = vld [vmem:[%s576_s4] sm:$0xff]  }
   0x7   :  { %352 = vmatmul.mubr.msk.bf16.vlgmr.msra.gmra.mrb[0].mxu0 %vm42_vm1, %v382_v4  ;;  %369 = vmatprep.subr.bf16.mxu1 %v438_v2  ;;  %v332_v13 = vld [vmem:[%s575_s3] ss:$0 sm:$0xff] }
   0x8   :  { %365 = vmatprep.mubr.msk.bf16.mxu0 %vm439_vm0, %v438_v2  ;;  %362 = vmatpush3.bf16.msra.mxu0 %v384_v11  ;;  %v338_v28 = vld [vmem:[%s577_s5] ss:$0 sm:$0xff]  ;;  %s441_s5 = smov [#allocation2]  }
   0x9   :  { %363 = vmatprep.subr.bf16.mxu0 %v438_v2  ;;  %s299_s21 = sshll.u32 %s441_s5, 4  ;;  %s300_s21 = int_to_ptr.vmem [resolvable:$true] %s299_s21 }
   0xa   :  { %s390_s22 = scalar_lea.vmem %s300_s21, 256  ;;  %p395_p1 = scmp.lt.s32.totalorder %s300_s21, %s300_s21 }
   0xb   :  { %p391_p0 = scmp.ne.s32.totalorder %s300_s21, %s390_s22  ;;  %p396_p2 = scmp.lt.s32.totalorder %s390_s22, %s390_s22 }
   0xc   :  { %364 = vmatpush3.bf16.msra.mxu0 %v385_v12 }
   0xd   :  { %p397_p3 = por %p396_p2, %p395_p1 }
   0xf   :  { %p398_p4 = pnand %p397_p3, %p391_p0 }
  0xda   :  { %v80_v6 = vpop.f32.mrb[0].mxu0 }
  0xdb   :  { %v353_v7 = vpop.f32.mrb[1].mxu0 }
  0xdc   :  { %v83_v8 = vpop.f32.mrb[2].mxu0 }
  0xdd   :  { %v87_v9 = vpack.c.bf16 %v83_v8, %v80_v6  ;;  %v354_v10 = vpop.f32.mrb[3].mxu0 }
  0xdf   :  { %358 = vmatmul.mubr.msk.bf16.vlgmr.msra.gmra.mrb[0].mxu1 %vm42_vm1, %v87_v9 }
  0xe0   :  { %371 = vmatprep.mubr.msk.bf16.mxu1 %vm439_vm0, %v438_v2 }
 0x1b2   :  { %v140_v14 = vpop.f32.mrb[0].mxu1 }
 0x1b3   :  { %v141_v15 = vadd.f32 %v332_v13, %v140_v14  ;;  %v359_v16 = vpop.f32.mrb[1].mxu1 }
 0x1b4   :  { %v143_v17 = vpop.f32.mrb[2].mxu1 }
 0x1b5   :  { %v144_v18 = vadd.f32 %v332_v13, %v143_v17  ;;  %v360_v19 = vpop.f32.mrb[3].mxu1  ;;  %v147_v20 = vmax.f32 %v141_v15, 0.0 }
 0x1b7   :  { %v148_v21 = vmax.f32 %v144_v18, 0.0 }
 0x1b9   :  { %v149_v22 = vpack.c.bf16 %v148_v21, %v147_v20 }
 0x1bb   :  { %366 = vmatmul.mubr.msk.bf16.vlgmr.msra.gmra.mrb[4].mxu0 %vm166_vm2, %v149_v22 }
 0x28e   :  { %v204_v23 = vpop.f32.mrb[4].mxu0 }
 0x28f   :  { %v367_v24 = vpop.f32.mrb[5].mxu0 }
 0x290   :  { %v207_v25 = vpop.f32.mrb[6].mxu0 }
 0x291   :  { %v211_v26 = vpack.c.bf16 %v207_v25, %v204_v23  ;;  %v368_v27 = vpop.f32.mrb[7].mxu0 }
 0x293   :  { %370 = vmatpush3.bf16.msra.mxu1 %v211_v26 }
 0x296   :  { %372 = vmatmul.mubr.msk.bf16.vlgmr.msra.gmra.mrb[4].mxu1 %vm42_vm1, %v382_v4 }
 0x369   :  { %v253_v29 = vpop.f32.mrb[4].mxu1 }
 0x36a   :  { %v254_v30 = vadd.f32 %v338_v28, %v253_v29  ;;  %v373_v31 = vpop.f32.mrb[5].mxu1 }
 0x36b   :  { %v256_v32 = vpop.f32.mrb[6].mxu1 }
 0x36c   :  { %v274_v33 = vmul.f32 0.5, %v254_v30  ;;  %260 = vst.msk [vmem:[#allocation2] sm:$0xff] %vm42_vm1, %v254_v30  ;;  %264 = vrot.lane.b32.xlu1 %v254_v30, %s440_s20  ;;  %v257_v34 = vadd.f32 %v338_v28, %v256_v32  ;;  %v374_v35 = vpop.f32.mrb[7].mxu1 }
 0x36e   :  { %v276_v36 = vmul.f32 1.442695, %v274_v33  ;;  %v275_v37 = vmul.f32 0.5, %v257_v34  ;;  %261 = vst.msk [vmem:[#allocation2 + $0x8] sm:$0xff] %vm42_vm1, %v257_v34 }
 0x370   :  { %386 = vpow2.f32 %v276_v36  ;;  %v278_v38 = vmul.f32 1.442695, %v275_v37  ;;  %266 = vrot.lane.b32.xlu1 %v257_v34, %s440_s20 }
 0x372   :  { %388 = vpow2.f32 %v278_v38 }
 0x373   :  { %401 = shalt.err (!%p398_p4)
}
 0x374   :  { %s402_s25 = scalar_lea.hbm %s579_s7, 256 }
 0x375   :  { %p403_p5 = scmp.ne.s32.totalorder %s579_s7, %s402_s25  ;;  %p406_p6 = scmp.lt.u32.totalorder %s402_s25, %s579_s7 }
 0x377   :  { %p408_p7 = pnand %p406_p6, %p403_p5 }
 0x379   :  { %411 = shalt.err (!%p408_p7)
}
 0x37a   :  { %s442_s30 = smov 128   ;;  %s443_s10 = smov 8   ;;  %v387_v39 = vpop.eup %386 }
 0x37b   :  { %305 = dma.vmem_to_hbm [thread:$0]  %s300_s21, 256, %s579_s7, [#allocation3], %s442_s30, %s442_s30, %s443_s10  }
 0x37c   :  { %282 = vrot.lane.b32.xlu0 %v387_v39, %s440_s20  ;;  %v389_v40 = vpop.eup %388  ;;  %s444_s13 = smov [#allocation4]  }
 0x37d   :  { %s311_s14 = sshll.u32 %s444_s13, 4  ;;  %s312_s14 = int_to_ptr.vmem [resolvable:$true] %s311_s14 }
 0x37e   :  { %s412_s1 = scalar_lea.vmem %s312_s14, 256  ;;  %p417_p9 = scmp.lt.s32.totalorder %s312_s14, %s312_s14 }
 0x37f   :  { %p413_p8 = scmp.ne.s32.totalorder %s312_s14, %s412_s1  ;;  %p418_p10 = scmp.lt.s32.totalorder %s412_s1, %s412_s1 }
 0x380   :  { %284 = vrot.lane.b32.xlu0 %v389_v40, %s440_s20 }
 0x381   :  { %p419_p11 = por %p418_p10, %p417_p9 }
 0x383   :  { %p420_p12 = pnand %p419_p11, %p413_p8 }
 0x3de   :  { %v265_v41 = vpop.permute.xlu1 %264 }
 0x3df   :  { %270 = vst.msk [vmem:[#allocation4] sm:$0xff] %vm42_vm1, %v265_v41 }
 0x3e2   :  { %v267_v42 = vpop.permute.xlu1 %266 }
 0x3e3   :  { %271 = vst.msk [vmem:[#allocation4 + $0x8] sm:$0xff] %vm42_vm1, %v267_v42 }
 0x3e4   :  { %423 = shalt.err (!%p420_p12)
}
 0x3e5   :  { %s424_s0 = scalar_lea.hbm %s580_s8, 256 }
 0x3e6   :  { %p425_p13 = scmp.ne.s32.totalorder %s580_s8, %s424_s0  ;;  %p428_p0 = scmp.lt.u32.totalorder %s424_s0, %s580_s8 }
 0x3e8   :  { %p430_p1 = pnand %p428_p0, %p425_p13 }
 0x3ea   :  { %433 = shalt.err (!%p430_p1)
}
 0x3eb   :  { %317 = dma.vmem_to_hbm [thread:$0]  %s312_s14, 256, %s580_s8, [#allocation5], %s442_s30, %s442_s30, %s443_s10  }
 0x3ec   :  { %v272_v43 = vld [vmem:[%s578_s6] sm:$0xff]  ;;  %v273_v46 = vld [vmem:[%s578_s6 + $0x8] sm:$0xff] }
 0x3ee   :  { %v283_v44 = vpop.permute.xlu0 %282 }
 0x3ef   :  { %v288_v45 = vmul.f32 %v283_v44, %v272_v43 }
 0x3f1   :  { %v290_v47 = vadd.f32 %v288_v45, %v254_v30 }
 0x3f2   :  { %v285_v48 = vpop.permute.xlu0 %284 }
 0x3f3   :  { %292 = vst.msk [vmem:[%s581_s9] sm:$0xff] %vm42_vm1, %v290_v47  ;;  %v289_v49 = vmul.f32 %v285_v48, %v273_v46 }
 0x3f5   :  { %v291_v50 = vadd.f32 %v289_v49, %v257_v34 }
 0x3f7   :  { %293 = vst.msk [vmem:[%s581_s9 + $0x8] sm:$0xff] %vm42_vm1, %v291_v50 }
 0x3f8   :  { %434 = dma.done.wait [#allocation3], 256  }
 0x3f9   :  { %435 = vsyncadd [#allocation3], 4294967040 }
 0x3fa   :  { %436 = dma.done.wait [#allocation5], 256  }
 0x3fb   :  { %437 = vsyncadd [#allocation5], 4294967040 }
 0x3fc   :  { %328 = vsyncpa [#allocation3], 1 }
 0x3fd   :  { %329 = vsyncpa [#allocation5], 1 }

</bundles_post_ra>
